<compile_context>
chip_gen: v7x
topology: tpu7x:2x2x1
jax: 0.10.0
libtpu: 0.0.40
codegen_flags: <defaults>
</compile_context>

<pallas_src>
import jax
import jax.numpy as jnp
import numpy as np
from jax.experimental import pallas as pl
from jax.experimental.pallas import tpu as pltpu


def _round_up(x, m):
    return ((x + m - 1) // m) * m


# ---------------------------------------------------------------------------
# Main kernel: node one-hot + mean-aggregation of edge messages per dst node.
# ---------------------------------------------------------------------------
def _make_node_kernel(L, Lp, TN, TE):

    def kernel(dst_idx_ref, src_lab_ref, dst_lab_ref, node_lab_ref,
               onehot_ref, agg_ref, acc_ref):
        i = pl.program_id(0)                      # node-tile index (parallel)
        j = pl.program_id(1)                      # edge-tile index (reduction)
        f32 = jnp.float32

        @pl.when(j == 0)
        def _init():
            acc_ref[...] = jnp.zeros_like(acc_ref)

        # Destination-incidence tile: S[n, e] = (dst(e) == global node row).
        # Padded edges carry dst == -1 and never match.
        node_iota = jax.lax.broadcasted_iota(jnp.int32, (TN, TE), 0) + i * TN
        S = (node_iota == dst_idx_ref[...]).astype(jnp.bfloat16)       # (TN,TE)

        # Message tile: 0.5*(onehot(src_label) + onehot(dst_label)).  The lane
        # at index L carries 1.0 so the SAME matmul also accumulates in-degree
        # (degree fused into MXU; no XLU cross-lane reduction).
        lane = jax.lax.broadcasted_iota(jnp.int32, (TE, Lp), 1)
        eq_src = (lane == src_lab_ref[...]).astype(f32)
        eq_dst = (lane == dst_lab_ref[...]).astype(f32)
        msg = 0.5 * (eq_src + eq_dst)
        msg = jnp.where(lane == L, 1.0, msg).astype(jnp.bfloat16)      # (TE,Lp)

        # bf16 MXU operands (exact for {0, 0.5, 1}); f32 accumulation.
        acc_ref[...] += jnp.dot(S, msg, preferred_element_type=jnp.float32)

        @pl.when(j == pl.num_programs(1) - 1)
        def _finalize():
            acc = acc_ref[...]                                         # (TN,Lp)
            deg = acc[:, L:L + 1]                                      # (TN, 1)
            # Mask applied to the reciprocal itself so deg==0 rows store 0.
            inv_deg = jnp.where(deg > 0.0,
                                pl.reciprocal(deg, approx=True),
                                0.0)
            agg_ref[...] = acc * inv_deg

            # Node one-hot (independent of the reduction; once per row tile).
            lane_n = jax.lax.broadcasted_iota(jnp.int32, (TN, Lp), 1)
            onehot_ref[...] = (lane_n == node_lab_ref[...]).astype(f32)

    return kernel


# ---------------------------------------------------------------------------
# Edge-feature kernel: e_feat = row_normalize([s, d, s+d]), stored lane-dense
# as (3, E) with E on the lane axis; transposed to (E, 3) in the wrapper.
# ---------------------------------------------------------------------------
def _make_edge_kernel(TE):

    def kernel(src_row_ref, dst_row_ref, ef_ref):
        f32 = jnp.float32
        s = src_row_ref[...].astype(f32)                               # (1, TE)
        d = dst_row_ref[...].astype(f32)
        sd = s + d
        row_sum = 2.0 * sd                                             # s+d+(s+d)
        r_inv = jnp.where(row_sum > 0.0,
                          pl.reciprocal(row_sum, approx=True),
                          0.0)                                         # inf -> 0
        row = jax.lax.broadcasted_iota(jnp.int32, (3, TE), 0)
        vals = jnp.where(row == 0, s, jnp.where(row == 1, d, sd))      # (3, TE)
        ef_ref[...] = vals * r_inv

    return kernel


def graph_preprocessor_forward(node_labels, edge_src, edge_dst, num_labels=None):
    """
    node_labels : (N,) int  node label per node
    edge_src    : (E,) int  source node index per edge
    edge_dst    : (E,) int  destination node index per edge
    num_labels  : static number of label classes (== max_node_labels + 1)
    Returns (n_feat (N, 2L) f32, e_feat (E, 3) f32).
    """
    N = int(node_labels.shape[0])
    E = int(edge_src.shape[0])
    if num_labels is None:
        # TODO(synk): data-dependent label count forces a host sync + recompile;
        # prefer passing num_labels statically.
        num_labels = int(jnp.max(node_labels)) + 1
    L = int(num_labels)
    Lp = _round_up(L + 1, 128)            # +1 lane holds the fused degree column

    # Tile sizes sized against the 32 MiB default scoped-VMEM budget (v7x/v6e);
    # TE (matmul K dim) kept a multiple of 128 (v5e MXU), TN a multiple of 8.
    TN = min(256, _round_up(N, 8))
    TE = min(1024, _round_up(E, 128))
    Np = _round_up(N, TN)
    Ep = _round_up(E, TE)
    nN, nE = Np // TN, Ep // TE

    node_labels = node_labels.astype(jnp.int32)
    edge_src = edge_src.astype(jnp.int32)
    edge_dst = edge_dst.astype(jnp.int32)

    # Glue (tiny gathers / pads / reshapes) stays in plain XLA.
    lab_pad = jnp.pad(node_labels, (0, Np - N))
    src_lab = jnp.pad(node_labels[edge_src], (0, Ep - E))
    dst_lab = jnp.pad(node_labels[edge_dst], (0, Ep - E))
    dst_idx = jnp.pad(edge_dst, (0, Ep - E), constant_values=-1)   # -1: no node

    node_lab_col = lab_pad.reshape(Np, 1)
    src_lab_col = src_lab.reshape(Ep, 1)
    dst_lab_col = dst_lab.reshape(Ep, 1)
    dst_idx_row = dst_idx.reshape(1, Ep)
    src_lab_row = src_lab.reshape(1, Ep)
    dst_lab_row = dst_lab.reshape(1, Ep)

    onehot_pad, agg_pad = pl.pallas_call(
        _make_node_kernel(L, Lp, TN, TE),
        grid=(nN, nE),
        in_specs=[
            pl.BlockSpec((1, TE), lambda i, j: (0, j)),    # dst node indices
            pl.BlockSpec((TE, 1), lambda i, j: (j, 0)),    # src labels
            pl.BlockSpec((TE, 1), lambda i, j: (j, 0)),    # dst labels
            pl.BlockSpec((TN, 1), lambda i, j: (i, 0)),    # node labels
        ],
        out_specs=(
            pl.BlockSpec((TN, Lp), lambda i, j: (i, 0)),   # one-hot half
            pl.BlockSpec((TN, Lp), lambda i, j: (i, 0)),   # aggregated half
        ),
        out_shape=(jax.ShapeDtypeStruct((Np, Lp), jnp.float32),
                   jax.ShapeDtypeStruct((Np, Lp), jnp.float32)),
        scratch_shapes=[pltpu.VMEM((TN, Lp), jnp.float32)],
        compiler_params=pltpu.CompilerParams(
            dimension_semantics=("parallel", "arbitrary")),
    )(dst_idx_row, src_lab_col, dst_lab_col, node_lab_col)

    ef_pad = pl.pallas_call(
        _make_edge_kernel(TE),
        grid=(nE,),
        in_specs=[pl.BlockSpec((1, TE), lambda j: (0, j)),
                  pl.BlockSpec((1, TE), lambda j: (0, j))],
        out_specs=pl.BlockSpec((3, TE), lambda j: (0, j)),
        out_shape=jax.ShapeDtypeStruct((3, Ep), jnp.float32),
        compiler_params=pltpu.CompilerParams(
            dimension_semantics=("parallel",)),
    )(src_lab_row, dst_lab_row)

    n_feat = jnp.concatenate([onehot_pad[:N, :L], agg_pad[:N, :L]], axis=1)
    e_feat = ef_pad[:, :E].T
    return n_feat, e_feat


def _reference(node_labels, edge_src, edge_dst, num_labels):
    """Pure-JAX reference of the same forward semantics."""
    N = node_labels.shape[0]
    L = int(num_labels)
    oh = jax.nn.one_hot(node_labels, L, dtype=jnp.float32)
    msg = 0.5 * (oh[edge_src] + oh[edge_dst])
    deg = jnp.zeros((N,), jnp.float32).at[edge_dst].add(1.0)
    summed = jnp.zeros((N, L), jnp.float32).at[edge_dst].add(msg)
    agg = jnp.where(deg[:, None] > 0, summed / jnp.maximum(deg[:, None], 1.0), 0.0)
    n_feat = jnp.concatenate([oh, agg], axis=1)
    s = node_labels[edge_src].astype(jnp.float32)
    d = node_labels[edge_dst].astype(jnp.float32)
    ef = jnp.stack([s, d, s + d], axis=1)
    rs = jnp.sum(ef, axis=1, keepdims=True)
    r_inv = jnp.where(rs == 0.0, 0.0, 1.0 / rs)
    return n_feat, r_inv * ef


def _check(node_labels, edge_src, edge_dst, num_labels):
    n_feat, e_feat = graph_preprocessor_forward(
        node_labels, edge_src, edge_dst, num_labels=num_labels)
    jax.block_until_ready((n_feat, e_feat))
    n_ref, e_ref = _reference(node_labels, edge_src, edge_dst, num_labels)
    # EUP approximate reciprocal (pl.reciprocal(approx=True)) -> relaxed tol.
    np.testing.assert_allclose(np.asarray(n_feat), np.asarray(n_ref),
                               rtol=1e-2, atol=1e-2)
    np.testing.assert_allclose(np.asarray(e_feat), np.asarray(e_ref),
                               rtol=1e-2, atol=1e-2)


if __name__ == "__main__":
    key = jax.random.PRNGKey(0)

    # --- small graph: N=8 nodes, E=16 edges (ring guarantees in-degree>=1) ---
    k_lab, k_src, k_dst, key = jax.random.split(key, 4)
    N, E_extra, NUM_LABELS = 8, 8, 4
    node_labels = jax.random.randint(k_lab, (N,), 0, NUM_LABELS, dtype=jnp.int32)
    ring_src = jnp.arange(N, dtype=jnp.int32)
    ring_dst = (ring_src + 1) % N
    extra_src = jax.random.randint(k_src, (E_extra,), 0, N, dtype=jnp.int32)
    extra_dst = jax.random.randint(k_dst, (E_extra,), 0, N, dtype=jnp.int32)
    _check(node_labels,
           jnp.concatenate([ring_src, extra_src]),
           jnp.concatenate([ring_dst, extra_dst]),
           NUM_LABELS)

    # --- larger graph exercising multi-tile grid + padding (N=300, E=2500) ---
    k_lab2, k_src2, k_dst2, key = jax.random.split(key, 4)
    N2, E_extra2, NUM_LABELS2 = 300, 2200, 7
    node_labels2 = jax.random.randint(k_lab2, (N2,), 0, NUM_LABELS2,
                                      dtype=jnp.int32)
    ring_src2 = jnp.arange(N2, dtype=jnp.int32)
    ring_dst2 = (ring_src2 + 1) % N2
    extra_src2 = jax.random.randint(k_src2, (E_extra2,), 0, N2, dtype=jnp.int32)
    extra_dst2 = jax.random.randint(k_dst2, (E_extra2,), 0, N2, dtype=jnp.int32)
    _check(node_labels2,
           jnp.concatenate([ring_src2, extra_src2]),
           jnp.concatenate([ring_dst2, extra_dst2]),
           NUM_LABELS2)

    print("KERNEL_OK")
</pallas_src>

<mosaic_0001>
module attributes {stable_mosaic.version = 11 : i64} {
  func.func @kernel(%arg0: i32, %arg1: i32, %arg2: memref<1x128xi32, #tpu.memory_space<vmem>>, %arg3: memref<128x1xi32, #tpu.memory_space<vmem>>, %arg4: memref<128x1xi32, #tpu.memory_space<vmem>>, %arg5: memref<8x1xi32, #tpu.memory_space<vmem>>, %arg6: memref<8x128xf32, #tpu.memory_space<vmem>>, %arg7: memref<8x128xf32, #tpu.memory_space<vmem>>, %arg8: memref<8x128xf32, #tpu.memory_space<vmem>>) attributes {dimension_semantics = [#tpu.dimension_semantics<parallel>, #tpu.dimension_semantics<arbitrary>], iteration_bounds = array<i64: 1, 1>, scalar_prefetch = 0 : i64, scratch_operands = 1 : i64, tpu.core_type = #tpu.core_type<tc>, window_params = [{transform_indices = @transform_0, window_bounds = array<i64: 1, 128>}, {transform_indices = @transform_1, window_bounds = array<i64: 128, 1>}, {transform_indices = @transform_2, window_bounds = array<i64: 128, 1>}, {transform_indices = @transform_3, window_bounds = array<i64: 8, 1>}, {transform_indices = @transform_4, window_bounds = array<i64: 8, 128>}, {transform_indices = @transform_5, window_bounds = array<i64: 8, 128>}]} {
    %c0_i32 = arith.constant 0 : i32
    %0 = arith.cmpi eq, %arg1, %c0_i32 : i32
    %1 = arith.extui %0 : i1 to i32
    %c0_i32_0 = arith.constant 0 : i32
    %2 = arith.cmpi ne, %1, %c0_i32_0 : i32
    scf.if %2 {
      %cst_14 = arith.constant 0.000000e+00 : f32
      %39 = vector.broadcast %cst_14 : f32 to vector<8x128xf32>
      %c0_15 = arith.constant 0 : index
      %c0_16 = arith.constant 0 : index
      %40 = vector.load %arg8[%c0_15, %c0_16] : memref<8x128xf32, #tpu.memory_space<vmem>>, vector<8x128xf32>
      tpu.vector_store %arg8[%c0_15, %c0_16], %39 {strides = array<i32>} : memref<8x128xf32, #tpu.memory_space<vmem>>, vector<8x128xf32>,
    } else {
    }
    %3 = tpu.iota {dimensions = array<i32: 0>} : vector<8x128xi32>
    %c8_i32 = arith.constant 8 : i32
    %4 = arith.muli %arg0, %c8_i32 : i32
    %5 = vector.broadcast %4 : i32 to vector<8x128xi32>
    %6 = arith.addi %3, %5 : vector<8x128xi32>
    %c0 = arith.constant 0 : index
    %c0_1 = arith.constant 0 : index
    %7 = vector.load %arg2[%c0, %c0_1] : memref<1x128xi32, #tpu.memory_space<vmem>>, vector<1x128xi32>
    %8 = vector.broadcast %7 : vector<1x128xi32> to vector<8x128xi32>
    %9 = arith.cmpi eq, %6, %8 : vector<8x128xi32>
    %10 = arith.extui %9 : vector<8x128xi1> to vector<8x128xi32>
    %11 = arith.sitofp %10 : vector<8x128xi32> to vector<8x128xf32>
    %12 = arith.truncf %11 : vector<8x128xf32> to vector<8x128xbf16>
    %13 = tpu.iota {dimensions = array<i32: 1>} : vector<128x128xi32>
    %c0_2 = arith.constant 0 : index
    %c0_3 = arith.constant 0 : index
    %14 = vector.load %arg3[%c0_2, %c0_3] : memref<128x1xi32, #tpu.memory_space<vmem>>, vector<128x1xi32>
    %15 = vector.broadcast %14 : vector<128x1xi32> to vector<128x128xi32>
    %16 = arith.cmpi eq, %13, %15 : vector<128x128xi32>
    %17 = arith.extui %16 : vector<128x128xi1> to vector<128x128xi32>
    %18 = arith.sitofp %17 : vector<128x128xi32> to vector<128x128xf32>
    %c0_4 = arith.constant 0 : index
    %c0_5 = arith.constant 0 : index
    %19 = vector.load %arg4[%c0_4, %c0_5] : memref<128x1xi32, #tpu.memory_space<vmem>>, vector<128x1xi32>
    %20 = vector.broadcast %19 : vector<128x1xi32> to vector<128x128xi32>
    %21 = arith.cmpi eq, %13, %20 : vector<128x128xi32>
    %22 = arith.extui %21 : vector<128x128xi1> to vector<128x128xi32>
    %23 = arith.sitofp %22 : vector<128x128xi32> to vector<128x128xf32>
    %24 = arith.addf %18, %23 : vector<128x128xf32>
    %cst = arith.constant 5.000000e-01 : f32
    %25 = vector.broadcast %cst : f32 to vector<128x128xf32>
    %26 = arith.mulf %25, %24 : vector<128x128xf32>
    %c4_i32 = arith.constant 4 : i32
    %27 = vector.broadcast %c4_i32 : i32 to vector<128x128xi32>
    %28 = arith.cmpi eq, %13, %27 : vector<128x128xi32>
    %cst_6 = arith.constant 1.000000e+00 : f32
    %29 = vector.broadcast %cst_6 : f32 to vector<128x128xf32>
    %30 = arith.select %28, %29, %26 : vector<128x128xi1>, vector<128x128xf32>
    %31 = arith.truncf %30 : vector<128x128xf32> to vector<128x128xbf16>
    %c0_7 = arith.constant 0 : index
    %c0_8 = arith.constant 0 : index
    %32 = vector.load %arg8[%c0_7, %c0_8] : memref<8x128xf32, #tpu.memory_space<vmem>>, vector<8x128xf32>
    %cst_9 = arith.constant dense<0.000000e+00> : vector<8x128xf32>
    %33 = tpu.matmul %12, %31, %cst_9 {dimension_numbers = #tpu.dot_dimension_numbers<[1], [0], [0], [1], [0, 0, 1, 1], [], []>} : vector<8x128xbf16>, vector<128x128xbf16>, vector<8x128xf32> -> vector<8x128xf32>
    %34 = arith.addf %32, %33 : vector<8x128xf32>
    %c0_10 = arith.constant 0 : index
    %c0_11 = arith.constant 0 : index
    %35 = vector.load %arg8[%c0_10, %c0_11] : memref<8x128xf32, #tpu.memory_space<vmem>>, vector<8x128xf32>
    tpu.vector_store %arg8[%c0_10, %c0_11], %34 {strides = array<i32>} : memref<8x128xf32, #tpu.memory_space<vmem>>, vector<8x128xf32>,
    %c0_i32_12 = arith.constant 0 : i32
    %36 = arith.cmpi eq, %arg1, %c0_i32_12 : i32
    %37 = arith.extui %36 : i1 to i32
    %c0_i32_13 = arith.constant 0 : i32
    %38 = arith.cmpi ne, %37, %c0_i32_13 : i32
    scf.if %38 {
      %c0_14 = arith.constant 0 : index
      %c0_15 = arith.constant 0 : index
      %39 = vector.load %arg8[%c0_14, %c0_15] : memref<8x128xf32, #tpu.memory_space<vmem>>, vector<8x128xf32>
      %40 = vector.extract_strided_slice %39 {offsets = [0, 4], sizes = [8, 1], strides = [1, 1]} : vector<8x128xf32> to vector<8x1xf32>
      %cst_16 = arith.constant 0.000000e+00 : f32
      %41 = vector.broadcast %cst_16 : f32 to vector<8x1xf32>
      %42 = arith.cmpf ogt, %40, %41 : vector<8x1xf32>
      %43 = tpu.reciprocal %40 {approx = true} : vector<8x1xf32> -> vector<8x1xf32>
      %cst_17 = arith.constant 0.000000e+00 : f32
      %44 = vector.broadcast %cst_17 : f32 to vector<8x1xf32>
      %45 = arith.select %42, %43, %44 : vector<8x1xi1>, vector<8x1xf32>
      %46 = vector.broadcast %45 : vector<8x1xf32> to vector<8x128xf32>
      %47 = arith.mulf %39, %46 : vector<8x128xf32>
      %c0_18 = arith.constant 0 : index
      %c0_19 = arith.constant 0 : index
      %48 = vector.load %arg7[%c0_18, %c0_19] : memref<8x128xf32, #tpu.memory_space<vmem>>, vector<8x128xf32>
      tpu.vector_store %arg7[%c0_18, %c0_19], %47 {strides = array<i32>} : memref<8x128xf32, #tpu.memory_space<vmem>>, vector<8x128xf32>,
      %49 = tpu.iota {dimensions = array<i32: 1>} : vector<8x128xi32>
      %c0_20 = arith.constant 0 : index
      %c0_21 = arith.constant 0 : index
      %50 = vector.load %arg5[%c0_20, %c0_21] : memref<8x1xi32, #tpu.memory_space<vmem>>, vector<8x1xi32>
      %51 = vector.broadcast %50 : vector<8x1xi32> to vector<8x128xi32>
      %52 = arith.cmpi eq, %49, %51 : vector<8x128xi32>
      %53 = arith.extui %52 : vector<8x128xi1> to vector<8x128xi32>
      %54 = arith.sitofp %53 : vector<8x128xi32> to vector<8x128xf32>
      %c0_22 = arith.constant 0 : index
      %c0_23 = arith.constant 0 : index
      %55 = vector.load %arg6[%c0_22, %c0_23] : memref<8x128xf32, #tpu.memory_space<vmem>>, vector<8x128xf32>
      tpu.vector_store %arg6[%c0_22, %c0_23], %54 {strides = array<i32>} : memref<8x128xf32, #tpu.memory_space<vmem>>, vector<8x128xf32>,
    } else {
    }
    return
  }
  func.func @transform_0(%arg0: i32, %arg1: i32) -> (i32, i32) {
    %c0_i32 = arith.constant 0 : i32
    %c0_i32_0 = arith.constant 0 : i32
    return %c0_i32, %arg1 : i32, i32
  }
  func.func @transform_1(%arg0: i32, %arg1: i32) -> (i32, i32) {
    %c0_i32 = arith.constant 0 : i32
    %c0_i32_0 = arith.constant 0 : i32
    return %arg1, %c0_i32 : i32, i32
  }
  func.func @transform_2(%arg0: i32, %arg1: i32) -> (i32, i32) {
    %c0_i32 = arith.constant 0 : i32
    %c0_i32_0 = arith.constant 0 : i32
    return %arg1, %c0_i32 : i32, i32
  }
  func.func @transform_3(%arg0: i32, %arg1: i32) -> (i32, i32) {
    %c0_i32 = arith.constant 0 : i32
    %c0_i32_0 = arith.constant 0 : i32
    return %arg0, %c0_i32 : i32, i32
  }
  func.func @transform_4(%arg0: i32, %arg1: i32) -> (i32, i32) {
    %c0_i32 = arith.constant 0 : i32
    %c0_i32_0 = arith.constant 0 : i32
    return %arg0, %c0_i32 : i32, i32
  }
  func.func @transform_5(%arg0: i32, %arg1: i32) -> (i32, i32) {
    %c0_i32 = arith.constant 0 : i32
    %c0_i32_0 = arith.constant 0 : i32
    return %arg0, %c0_i32 : i32, i32
  }
}

</mosaic_0001>

<bundles_post_ra>
// kernel: tpu_custom_call.1
= control target key start
LH: loop header
LB: loop body
LE: loop exit
PB: predicated region body
PF: predicated region fallthrough
CT: control target
= control target key end

     0   :  { %11 = vsyncpa [#allocation4], 0  ;;  %v544_v2 = vmov 0   ;;  %v545_v5 = vmov 0.0   ;;  %s822_s0 = inlined_call_operand.vmem [shape: s32[1,128], index: 0, kind: input, shape index: {}]   ;;  %s823_s1 = inlined_call_operand.vmem [shape: s32[128,1], index: 1, kind: input, shape index: {}]   ;;  %s824_s2 = inlined_call_operand.vmem [shape: s32[128,1], index: 2, kind: input, shape index: {}]   ;;  %s825_s3 = inlined_call_operand.vmem [shape: s32[8,1], index: 3, kind: input, shape index: {}]   ;;  %s826_s4 = inlined_call_operand.hbm [shape: f32[8,128], index: 4, kind: output, shape index: {0}]   ;;  %s827_s5 = inlined_call_operand.hbm [shape: f32[8,128], index: 5, kind: output, shape index: {1}]  }
   0x1   :  { %v155_v0 = vld [vmem:[%s824_s2] sm:$0xff]  ;;  %491 = vset.pattern.permute.xlu1 %v544_v2  ;;  %490 = vset.pattern.permute.xlu0 %v544_v2  ;;  %v156_v3 = vld [vmem:[%s824_s2 + $0x8] sm:$0xff]  ;;  %v46_v6 = vld [vmem:[%s823_s1 + $0x18] sm:$0xff] }
   0x2   :  { %v43_v1 = vld [vmem:[%s823_s1] sm:$0xff]  ;;  %172 = vperm.xlu1 %491, %v155_v0   ;;  %v44_v4 = vld [vmem:[%s823_s1 + $0x8] sm:$0xff]  ;;  %463 = vmatprep.subr.bf16.mxu0 %v545_v5  ;;  %v45_v7 = vld [vmem:[%s823_s1 + $0x10] sm:$0xff] }
   0x3   :  { %60 = vperm.xlu0 %490, %v43_v1   ;;  %v158_v8 = vld [vmem:[%s824_s2 + $0x18] sm:$0xff]  ;;  %v157_v9 = vld [vmem:[%s824_s2 + $0x10] sm:$0xff] }
   0x6   :  { %175 = vperm.xlu1 %491, %v156_v3  }
   0x7   :  { %63 = vperm.xlu0 %490, %v44_v4  }
   0xa   :  { %69 = vperm.xlu1 %491, %v46_v6  }
   0xb   :  { %66 = vperm.xlu0 %490, %v45_v7  }
   0xc   :  { %12 = vsyncpa [#allocation6], 0  ;;  %v48_v10 = vld [vmem:[%s823_s1 + $0x28] sm:$0xff]  ;;  %v47_v11 = vld [vmem:[%s823_s1 + $0x20] sm:$0xff]  ;;  %vm546_vm0 = vmmov 0   ;;  %v27_v35 = vlaneseq }
   0xd   :  { %v160_v12 = vld [vmem:[%s824_s2 + $0x28] sm:$0xff]  ;;  %v159_v13 = vld [vmem:[%s824_s2 + $0x20] sm:$0xff]  ;;  %v50_v14 = vld [vmem:[%s823_s1 + $0x38] sm:$0xff]  ;;  %479 = vmatprep.mubr.msk.bf16.mxu0 %vm546_vm0, %v545_v5 }
   0xe   :  { %181 = vperm.xlu1 %491, %v158_v8   ;;  %v49_v15 = vld [vmem:[%s823_s1 + $0x30] sm:$0xff]  ;;  %v162_v16 = vld [vmem:[%s824_s2 + $0x38] sm:$0xff]  ;;  %v52_v18 = vld [vmem:[%s823_s1 + $0x48] sm:$0xff]  ;;  %v685_v36 = vand.u32 127, %v27_v35 }
   0xf   :  { %178 = vperm.xlu0 %490, %v157_v9   ;;  %v161_v17 = vld [vmem:[%s824_s2 + $0x30] sm:$0xff]  ;;  %v51_v19 = vld [vmem:[%s823_s1 + $0x40] sm:$0xff]  ;;  %v164_v20 = vld [vmem:[%s824_s2 + $0x48] sm:$0xff] }
  0x10   :  { %v163_v21 = vld [vmem:[%s824_s2 + $0x40] sm:$0xff]  ;;  %v54_v22 = vld [vmem:[%s823_s1 + $0x58] sm:$0xff]  ;;  %v53_v23 = vld [vmem:[%s823_s1 + $0x50] sm:$0xff]  ;;  %vm299_vm5 = vcmp.eq.s32.totalorder %v685_v36, 4 }
  0x11   :  { %v166_v24 = vld [vmem:[%s824_s2 + $0x58] sm:$0xff]  ;;  %v165_v25 = vld [vmem:[%s824_s2 + $0x50] sm:$0xff]  ;;  %v56_v26 = vld [vmem:[%s823_s1 + $0x68] sm:$0xff] }
  0x12   :  { %75 = vperm.xlu1 %491, %v48_v10   ;;  %v55_v27 = vld [vmem:[%s823_s1 + $0x60] sm:$0xff]  ;;  %v168_v28 = vld [vmem:[%s824_s2 + $0x68] sm:$0xff]  ;;  %v58_v30 = vld [vmem:[%s823_s1 + $0x78] sm:$0xff] }
  0x13   :  { %72 = vperm.xlu0 %490, %v47_v11   ;;  %v167_v29 = vld [vmem:[%s824_s2 + $0x60] sm:$0xff]  ;;  %v57_v31 = vld [vmem:[%s823_s1 + $0x70] sm:$0xff]  ;;  %v170_v32 = vld [vmem:[%s824_s2 + $0x78] sm:$0xff] }
  0x14   :  { %v169_v33 = vld [vmem:[%s824_s2 + $0x70] sm:$0xff]  ;;  %v381_v34 = vld [vmem:[%s825_s3] sm:$0xff] }
  0x16   :  { %187 = vperm.xlu1 %491, %v160_v12  }
  0x17   :  { %184 = vperm.xlu0 %490, %v159_v13  }
  0x1a   :  { %81 = vperm.xlu1 %491, %v50_v14  }
  0x1b   :  { %78 = vperm.xlu0 %490, %v49_v15  }
  0x1e   :  { %193 = vperm.xlu1 %491, %v162_v16  }
  0x1f   :  { %190 = vperm.xlu0 %490, %v161_v17  }
  0x22   :  { %87 = vperm.xlu1 %491, %v52_v18  }
  0x23   :  { %84 = vperm.xlu0 %490, %v51_v19  }
  0x26   :  { %199 = vperm.xlu1 %491, %v164_v20  }
  0x27   :  { %196 = vperm.xlu0 %490, %v163_v21  }
  0x2a   :  { %93 = vperm.xlu1 %491, %v54_v22  }
  0x2b   :  { %90 = vperm.xlu0 %490, %v53_v23  }
  0x2e   :  { %205 = vperm.xlu1 %491, %v166_v24  }
  0x2f   :  { %202 = vperm.xlu0 %490, %v165_v25  }
  0x32   :  { %99 = vperm.xlu1 %491, %v56_v26  }
  0x33   :  { %96 = vperm.xlu0 %490, %v55_v27  }
  0x36   :  { %211 = vperm.xlu1 %491, %v168_v28  }
  0x37   :  { %208 = vperm.xlu0 %490, %v167_v29  }
  0x3a   :  { %105 = vperm.xlu1 %491, %v58_v30  }
  0x3b   :  { %102 = vperm.xlu0 %490, %v57_v31  }
  0x3e   :  { %217 = vperm.xlu1 %491, %v170_v32  }
  0x3f   :  { %214 = vperm.xlu0 %490, %v169_v33  }
  0x42   :  { %383 = vperm.xlu1 %491, %v381_v34  }
  0x81   :  { %v173_v37 = vpop.permute.xlu1 %172 }
  0x82   :  { %v61_v38 = vpop.permute.xlu0 %60  ;;  %vm219_vm1 = vcmp.eq.s32.totalorder %v685_v36, %v173_v37 }
  0x83   :  { %vm107_vm2 = vcmp.eq.s32.totalorder %v685_v36, %v61_v38  ;;  %v435_v39 = vsel %vm219_vm1, 1.0, %v545_v5 }
  0x84   :  { %v419_v40 = vsel %vm107_vm2, 1.0, %v545_v5 }
  0x85   :  { %v267_v41 = vadd.f32 %v435_v39, %v419_v40  ;;  %v176_v42 = vpop.permute.xlu1 %175 }
  0x86   :  { %v64_v43 = vpop.permute.xlu0 %63  ;;  %vm220_vm3 = vcmp.eq.s32.totalorder %v685_v36, %v176_v42 }
  0x87   :  { %vm108_vm4 = vcmp.eq.s32.totalorder %v685_v36, %v64_v43  ;;  %v436_v44 = vsel %vm220_vm3, 1.0, %v545_v5  ;;  %v283_v46 = vmul.f32 0.5, %v267_v41 }
  0x88   :  { %v420_v45 = vsel %vm108_vm4, 1.0, %v545_v5 }
  0x89   :  { %v268_v47 = vadd.f32 %v436_v44, %v420_v45  ;;  %v70_v48 = vpop.permute.xlu1 %69  ;;  %v300_v51 = vsel %vm299_vm5, 1.0, %v283_v46 }
  0x8a   :  { %v67_v49 = vpop.permute.xlu0 %66  ;;  %vm110_vm6 = vcmp.eq.s32.totalorder %v685_v36, %v70_v48 }
  0x8b   :  { %v284_v50 = vmul.f32 0.5, %v268_v47  ;;  %vm109_vm7 = vcmp.eq.s32.totalorder %v685_v36, %v67_v49  ;;  %v422_v56 = vsel %vm110_vm6, 1.0, %v545_v5 }
  0x8c   :  { %v421_v57 = vsel %vm109_vm7, 1.0, %v545_v5 }
  0x8d   :  { %v301_v52 = vsel %vm299_vm5, 1.0, %v284_v50  ;;  %v182_v53 = vpop.permute.xlu1 %181 }
  0x8e   :  { %v179_v54 = vpop.permute.xlu0 %178  ;;  %v316_v55 = vpack.c.bf16 %v301_v52, %v300_v51  ;;  %vm222_vm8 = vcmp.eq.s32.totalorder %v685_v36, %v182_v53 }
  0x8f   :  { %vm221_vm9 = vcmp.eq.s32.totalorder %v685_v36, %v179_v54  ;;  %v438_v58 = vsel %vm222_vm8, 1.0, %v545_v5 }
  0x90   :  { %v437_v59 = vsel %vm221_vm9, 1.0, %v545_v5  ;;  %464 = vmatpush3.bf16.msra.mxu0 %v316_v55  ;;  %v270_v60 = vadd.f32 %v438_v58, %v422_v56 }
  0x91   :  { %v269_v61 = vadd.f32 %v437_v59, %v421_v57  ;;  %465 = vmatprep.subr.bf16.mxu0 %v545_v5  ;;  %v76_v62 = vpop.permute.xlu1 %75 }
  0x92   :  { %v73_v63 = vpop.permute.xlu0 %72  ;;  %v286_v0 = vmul.f32 0.5, %v270_v60  ;;  %vm112_vm10 = vcmp.eq.s32.totalorder %v685_v36, %v76_v62 }
  0x93   :  { %v285_v1 = vmul.f32 0.5, %v269_v61  ;;  %vm111_vm11 = vcmp.eq.s32.totalorder %v685_v36, %v73_v63  ;;  %v424_v9 = vsel %vm112_vm10, 1.0, %v545_v5 }
  0x94   :  { %v303_v4 = vsel %vm299_vm5, 1.0, %v286_v0  ;;  %v423_v10 = vsel %vm111_vm11, 1.0, %v545_v5 }
  0x95   :  { %v302_v3 = vsel %vm299_vm5, 1.0, %v285_v1  ;;  %v188_v6 = vpop.permute.xlu1 %187 }
  0x96   :  { %v185_v7 = vpop.permute.xlu0 %184  ;;  %v317_v8 = vpack.c.bf16 %v303_v4, %v302_v3  ;;  %vm224_vm12 = vcmp.eq.s32.totalorder %v685_v36, %v188_v6 }
  0x97   :  { %vm223_vm13 = vcmp.eq.s32.totalorder %v685_v36, %v185_v7  ;;  %v440_v11 = vsel %vm224_vm12, 1.0, %v545_v5 }
  0x98   :  { %v439_v12 = vsel %vm223_vm13, 1.0, %v545_v5  ;;  %466 = vmatpush3.bf16.msra.mxu0 %v317_v8  ;;  %v272_v13 = vadd.f32 %v440_v11, %v424_v9 }
  0x99   :  { %v271_v14 = vadd.f32 %v439_v12, %v423_v10  ;;  %467 = vmatprep.subr.bf16.mxu0 %v545_v5  ;;  %v82_v15 = vpop.permute.xlu1 %81 }
  0x9a   :  { %v79_v16 = vpop.permute.xlu0 %78  ;;  %v288_v17 = vmul.f32 0.5, %v272_v13  ;;  %vm114_vm14 = vcmp.eq.s32.totalorder %v685_v36, %v82_v15 }
  0x9b   :  { %v287_v18 = vmul.f32 0.5, %v271_v14  ;;  %vm113_vm15 = vcmp.eq.s32.totalorder %v685_v36, %v79_v16  ;;  %v426_v24 = vsel %vm114_vm14, 1.0, %v545_v5 }
  0x9c   :  { %v305_v20 = vsel %vm299_vm5, 1.0, %v288_v17  ;;  %v425_v25 = vsel %vm113_vm15, 1.0, %v545_v5 }
  0x9d   :  { %v304_v19 = vsel %vm299_vm5, 1.0, %v287_v18  ;;  %v194_v21 = vpop.permute.xlu1 %193 }
  0x9e   :  { %v191_v22 = vpop.permute.xlu0 %190  ;;  %v318_v23 = vpack.c.bf16 %v305_v20, %v304_v19  ;;  %vm226_vm0 = vcmp.eq.s32.totalorder %v685_v36, %v194_v21 }
  0x9f   :  { %vm225_vm1 = vcmp.eq.s32.totalorder %v685_v36, %v191_v22  ;;  %v442_v26 = vsel %vm226_vm0, 1.0, %v545_v5 }
  0xa0   :  { %v441_v27 = vsel %vm225_vm1, 1.0, %v545_v5  ;;  %468 = vmatpush3.bf16.msra.mxu0 %v318_v23  ;;  %v274_v28 = vadd.f32 %v442_v26, %v426_v24 }
  0xa1   :  { %v273_v29 = vadd.f32 %v441_v27, %v425_v25  ;;  %469 = vmatprep.subr.bf16.mxu0 %v545_v5  ;;  %v88_v30 = vpop.permute.xlu1 %87 }
  0xa2   :  { %v85_v31 = vpop.permute.xlu0 %84  ;;  %v290_v32 = vmul.f32 0.5, %v274_v28  ;;  %vm116_vm2 = vcmp.eq.s32.totalorder %v685_v36, %v88_v30  ;;  %v28_v30 = vshrl.u32 %v27_v35, 7 }
  0xa3   :  { %v289_v33 = vmul.f32 0.5, %v273_v29  ;;  %vm115_vm3 = vcmp.eq.s32.totalorder %v685_v36, %v85_v31  ;;  %v428_v41 = vsel %vm116_vm2, 1.0, %v545_v5 }
  0xa4   :  { %v307_v37 = vsel %vm299_vm5, 1.0, %v290_v32  ;;  %v427_v42 = vsel %vm115_vm3, 1.0, %v545_v5  ;;  %v417_v32 = vld [vmem:[%s822_s0] ss:$0 sm:$0xff]  ;;  %s549_s0 = smov [#allocation3]  }
  0xa5   :  { %v306_v34 = vsel %vm299_vm5, 1.0, %v289_v33  ;;  %v200_v38 = vpop.permute.xlu1 %199  ;;  %s395_s3 = sshll.u32 %s549_s0, 4  ;;  %s396_s3 = int_to_ptr.vmem [resolvable:$true] %s395_s3 }
  0xa6   :  { %v197_v39 = vpop.permute.xlu0 %196  ;;  %v319_v40 = vpack.c.bf16 %v307_v37, %v306_v34  ;;  %vm228_vm4 = vcmp.eq.s32.totalorder %v685_v36, %v200_v38  ;;  %s496_s9 = scalar_lea.vmem %s396_s3, 128  ;;  %p501_p1 = scmp.lt.s32.totalorder %s396_s3, %s396_s3 }
  0xa7   :  { %vm227_vm6 = vcmp.eq.s32.totalorder %v685_v36, %v197_v39  ;;  %v444_v43 = vsel %vm228_vm4, 1.0, %v545_v5  ;;  %vm37_vm4 = vcmp.eq.s32.totalorder %v28_v30, %v417_v32  ;;  %p497_p0 = scmp.ne.s32.totalorder %s396_s3, %s496_s9  ;;  %p502_p2 = scmp.lt.s32.totalorder %s496_s9, %s496_s9 }
  0xa8   :  { %v443_v44 = vsel %vm227_vm6, 1.0, %v545_v5  ;;  %470 = vmatpush3.bf16.msra.mxu0 %v319_v40  ;;  %v276_v45 = vadd.f32 %v444_v43, %v428_v41  ;;  %vm451_vm6 = vmpackc.low %vm37_vm4, %vm37_vm4  ;;  %v547_v40 = vmov 1.0|1.0   ;;  %v548_v41 = vmov 4  }
  0xa9   :  { %v275_v46 = vadd.f32 %v443_v44, %v427_v42  ;;  %471 = vmatprep.subr.bf16.mxu0 %v545_v5  ;;  %v94_v47 = vpop.permute.xlu1 %93  ;;  %492 = vset.pattern.permute.xlu0 %v548_v41  ;;  %p503_p3 = por %p502_p2, %p501_p1 }
  0xaa   :  { %v91_v48 = vpop.permute.xlu0 %90  ;;  %v292_v49 = vmul.f32 0.5, %v276_v45  ;;  %vm118_vm7 = vcmp.eq.s32.totalorder %v685_v36, %v94_v47 }
  0xab   :  { %v291_v50 = vmul.f32 0.5, %v275_v46  ;;  %vm117_vm8 = vcmp.eq.s32.totalorder %v685_v36, %v91_v48  ;;  %v430_v56 = vsel %vm118_vm7, 1.0, %v545_v5  ;;  %p504_p4 = pnand %p503_p3, %p497_p0 }
  0xac   :  { %v309_v52 = vsel %vm299_vm5, 1.0, %v292_v49  ;;  %v429_v57 = vsel %vm117_vm8, 1.0, %v545_v5 }
  0xad   :  { %v308_v51 = vsel %vm299_vm5, 1.0, %v291_v50  ;;  %v206_v53 = vpop.permute.xlu1 %205 }
  0xae   :  { %v203_v54 = vpop.permute.xlu0 %202  ;;  %v320_v55 = vpack.c.bf16 %v309_v52, %v308_v51  ;;  %vm230_vm9 = vcmp.eq.s32.totalorder %v685_v36, %v206_v53 }
  0xaf   :  { %vm229_vm10 = vcmp.eq.s32.totalorder %v685_v36, %v203_v54  ;;  %v446_v58 = vsel %vm230_vm9, 1.0, %v545_v5 }
  0xb0   :  { %v445_v59 = vsel %vm229_vm10, 1.0, %v545_v5  ;;  %472 = vmatpush3.bf16.msra.mxu0 %v320_v55  ;;  %v278_v60 = vadd.f32 %v446_v58, %v430_v56 }
  0xb1   :  { %v277_v61 = vadd.f32 %v445_v59, %v429_v57  ;;  %473 = vmatprep.subr.bf16.mxu0 %v545_v5  ;;  %v100_v62 = vpop.permute.xlu1 %99 }
  0xb2   :  { %v97_v63 = vpop.permute.xlu0 %96  ;;  %v294_v0 = vmul.f32 0.5, %v278_v60  ;;  %vm120_vm11 = vcmp.eq.s32.totalorder %v685_v36, %v100_v62 }
  0xb3   :  { %v293_v1 = vmul.f32 0.5, %v277_v61  ;;  %vm119_vm12 = vcmp.eq.s32.totalorder %v685_v36, %v97_v63  ;;  %v432_v9 = vsel %vm120_vm11, 1.0, %v545_v5 }
  0xb4   :  { %v311_v4 = vsel %vm299_vm5, 1.0, %v294_v0  ;;  %v431_v10 = vsel %vm119_vm12, 1.0, %v545_v5 }
  0xb5   :  { %v310_v3 = vsel %vm299_vm5, 1.0, %v293_v1  ;;  %v212_v6 = vpop.permute.xlu1 %211 }
  0xb6   :  { %v209_v7 = vpop.permute.xlu0 %208  ;;  %v321_v8 = vpack.c.bf16 %v311_v4, %v310_v3  ;;  %vm232_vm13 = vcmp.eq.s32.totalorder %v685_v36, %v212_v6 }
  0xb7   :  { %vm231_vm14 = vcmp.eq.s32.totalorder %v685_v36, %v209_v7  ;;  %v448_v11 = vsel %vm232_vm13, 1.0, %v545_v5 }
  0xb8   :  { %v447_v12 = vsel %vm231_vm14, 1.0, %v545_v5  ;;  %474 = vmatpush3.bf16.msra.mxu0 %v321_v8  ;;  %v280_v13 = vadd.f32 %v448_v11, %v432_v9 }
  0xb9   :  { %v279_v14 = vadd.f32 %v447_v12, %v431_v10  ;;  %475 = vmatprep.subr.bf16.mxu0 %v545_v5  ;;  %v106_v15 = vpop.permute.xlu1 %105 }
  0xba   :  { %v103_v16 = vpop.permute.xlu0 %102  ;;  %v296_v17 = vmul.f32 0.5, %v280_v13  ;;  %vm122_vm15 = vcmp.eq.s32.totalorder %v685_v36, %v106_v15 }
  0xbb   :  { %v295_v18 = vmul.f32 0.5, %v279_v14  ;;  %vm121_vm0 = vcmp.eq.s32.totalorder %v685_v36, %v103_v16  ;;  %v434_v24 = vsel %vm122_vm15, 1.0, %v545_v5 }
  0xbc   :  { %v313_v20 = vsel %vm299_vm5, 1.0, %v296_v17  ;;  %v433_v25 = vsel %vm121_vm0, 1.0, %v545_v5 }
  0xbd   :  { %v312_v19 = vsel %vm299_vm5, 1.0, %v295_v18  ;;  %v218_v21 = vpop.permute.xlu1 %217 }
  0xbe   :  { %v215_v22 = vpop.permute.xlu0 %214  ;;  %v322_v23 = vpack.c.bf16 %v313_v20, %v312_v19  ;;  %vm234_vm1 = vcmp.eq.s32.totalorder %v685_v36, %v218_v21 }
  0xbf   :  { %vm233_vm2 = vcmp.eq.s32.totalorder %v685_v36, %v215_v22  ;;  %v450_v26 = vsel %vm234_vm1, 1.0, %v545_v5 }
  0xc0   :  { %v449_v27 = vsel %vm233_vm2, 1.0, %v545_v5  ;;  %476 = vmatpush3.bf16.msra.mxu0 %v322_v23  ;;  %v282_v28 = vadd.f32 %v450_v26, %v434_v24 }
  0xc1   :  { %v281_v29 = vadd.f32 %v449_v27, %v433_v25  ;;  %477 = vmatprep.subr.bf16.mxu0 %v545_v5  ;;  %v384_v31 = vpop.permute.xlu1 %383 }
  0xc2   :  { %v298_v33 = vmul.f32 0.5, %v282_v28  ;;  %vm385_vm3 = vcmp.eq.s32.totalorder %v685_v36, %v384_v31 }
  0xc3   :  { %v297_v34 = vmul.f32 0.5, %v281_v29  ;;  %v453_v37 = vsel %vm385_vm3, 1.0, %v545_v5 }
  0xc4   :  { %v315_v39 = vsel %vm299_vm5, 1.0, %v298_v33  ;;  %388 = vst [vmem:[#allocation3] sm:$0xff] %v453_v37 }
  0xc5   :  { %v314_v38 = vsel %vm299_vm5, 1.0, %v297_v34 }
  0xc6   :  { %v323_v35 = vpack.c.bf16 %v315_v39, %v314_v38 }
  0xc8   :  { %478 = vmatpush3.bf16.msra.mxu0 %v323_v35 }
  0xcb   :  { %480 = vmatmul.mubr.msk.bf16.vlgmr.msra.gmra.mrb[0].mxu0 %vm451_vm6, %v547_v40 }
 0x19e   :  { %v359_v42 = vpop.f32.mrb[0].mxu0 }
 0x19f   :  { %494 = vrcp.f32 %v359_v42  ;;  %v481_v43 = vpop.f32.mrb[1].mxu0  ;;  %vm371_vm7 = vcmp.gt.f32.partialorder %v359_v42, 0.0 }
 0x1a0   :  { %v362_v44 = vpop.f32.mrb[2].mxu0 }
 0x1a1   :  { %v482_v5 = vpop.f32.mrb[3].mxu0 }
 0x1a9   :  { %v495_v45 = vpop.eup %494 }
 0x1aa   :  { %v373_v46 = vsel %vm371_vm7, %v495_v45, 0.0 }
 0x1ab   :  { %376 = vperm.xlu0 %492, %v373_v46  }
 0x1ac   :  { %507 = shalt.err (!%p504_p4)
}
 0x1ad   :  { %s508_s12 = scalar_lea.hbm %s826_s4, 128 }
 0x1ae   :  { %p509_p5 = scmp.ne.s32.totalorder %s826_s4, %s508_s12  ;;  %p512_p6 = scmp.lt.u32.totalorder %s508_s12, %s826_s4 }
 0x1b0   :  { %p514_p7 = pnand %p512_p6, %p509_p5 }
 0x1b2   :  { %517 = shalt.err (!%p514_p7)
}
 0x1b3   :  { %398 = dma.vmem_to_hbm [thread:$0]  %s396_s3, 128, %s826_s4, [#allocation4]   ;;  %493 = vset.pattern.permute.xlu0 %v544_v2 }
 0x1b4   :  { %s550_s19 = smov [#allocation5]  }
 0x1b5   :  { %s405_s20 = sshll.u32 %s550_s19, 4  ;;  %s406_s20 = int_to_ptr.vmem [resolvable:$true] %s405_s20 }
 0x1b6   :  { %s518_s21 = scalar_lea.vmem %s406_s20, 128  ;;  %p523_p9 = scmp.lt.s32.totalorder %s406_s20, %s406_s20 }
 0x1b7   :  { %p519_p8 = scmp.ne.s32.totalorder %s406_s20, %s518_s21  ;;  %p524_p10 = scmp.lt.s32.totalorder %s518_s21, %s518_s21 }
 0x1b9   :  { %p525_p11 = por %p524_p10, %p523_p9 }
 0x1bb   :  { %p526_p12 = pnand %p525_p11, %p519_p8 }
 0x22a   :  { %v377_v36 = vpop.permute.xlu0 %376 }
 0x22b   :  { %v379_v47 = vmul.f32 %v377_v36, %v359_v42 }
 0x22d   :  { %380 = vst [vmem:[#allocation5] sm:$0xff] %v379_v47 }
 0x22e   :  { %529 = shalt.err (!%p526_p12)
}
 0x22f   :  { %s530_s24 = scalar_lea.hbm %s827_s5, 128 }
 0x230   :  { %p531_p13 = scmp.ne.s32.totalorder %s827_s5, %s530_s24  ;;  %p534_p0 = scmp.lt.u32.totalorder %s530_s24, %s827_s5 }
 0x232   :  { %p536_p1 = pnand %p534_p0, %p531_p13 }
 0x234   :  { %539 = shalt.err (!%p536_p1)
}
 0x235   :  { %408 = dma.vmem_to_hbm [thread:$0]  %s406_s20, 128, %s827_s5, [#allocation6]  }
 0x236   :  { %540 = dma.done.wait [#allocation4], 128  }
 0x237   :  { %541 = vsyncadd [#allocation4], 4294967168 }
 0x238   :  { %542 = dma.done.wait [#allocation6], 128  }
 0x239   :  { %543 = vsyncadd [#allocation6], 4294967168 }
 0x23a   :  { %415 = vsyncpa [#allocation4], 1 }
 0x23b   :  { %416 = vsyncpa [#allocation6], 1 }

</bundles_post_ra>
